<compile_context>
chip_gen: v5e
topology: v5e:2x2
jax: 0.10.0
libtpu: 0.0.40
codegen_flags: <defaults>
</compile_context>

<pallas_src>
import math

import jax
import jax.numpy as jnp
from jax.experimental import pallas as pl
from jax.experimental.pallas import tpu as pltpu

# ----- problem sizes (small, consistent with a tiny conv net) -----
N, CIN, H, W = 2, 4, 16, 16
COUT = 8
KH = KW = 3
NUM_CLASSES = 10
HW = H * W                    # 256
FEAT = COUT * HW              # 2048
KPATCH = KH * KW * CIN        # 36


# =====================================================================
# Fused kernel: conv(3x3, pad 1) + BN(eval, folded) + ReLU + flatten(C,H,W)
#               + Linear — single program, no grid.
# =====================================================================
def fused_forward_kernel(pT_ref, w1T_ref, b1_ref, w2_ref, o_ref):
    # pT_ref : (KPATCH, N*HW) = (36, 512)  im2col patches, transposed (lane-dense)
    # w1T_ref: (COUT, KPATCH) = (8, 36)    conv weight with BN scale folded in
    # b1_ref : (COUT, 1)                   folded BN shift (-mean/std)
    # w2_ref : (FEAT, NUM_CLASSES)         linear weight, (in, out); rows already
    #                                      in PyTorch flatten(C,H,W) order
    # o_ref  : (N, NUM_CLASSES)

    # All 9 conv taps and both batch elements in ONE MXU push: (8,36)@(36,512).
    hT = jnp.dot(w1T_ref[...], pT_ref[...], preferred_element_type=jnp.float32)
    # Folded BatchNorm(eval) + ReLU.  (COUT, N*HW) -> lane axis is 512-dense.
    hT = jnp.maximum(hT + b1_ref[...], 0.0)

    # Flatten to the PyTorch (N, C*H*W) activation matrix along the lane axis
    # via 128-aligned lane concats of sublane rows (no sublane<->lane reshape).
    rows = [
        jnp.concatenate(
            [hT[c:c + 1, n * HW:(n + 1) * HW] for c in range(COUT)], axis=1)
        for n in range(N)                                      # static, N == 2
    ]
    a = jnp.concatenate(rows, axis=0)                          # (N, FEAT)

    # Linear: single K=FEAT matmul for the whole batch, single output store.
    o_ref[...] = jnp.dot(a, w2_ref[...], preferred_element_type=jnp.float32)


def fused_forward(pT, w1T, b1, w2):
    flops = 2 * COUT * KPATCH * (N * HW) + 2 * N * FEAT * NUM_CLASSES
    bytes_accessed = 4 * (pT.size + w1T.size + b1.size + w2.size
                          + N * NUM_CLASSES)
    return pl.pallas_call(
        fused_forward_kernel,
        out_shape=jax.ShapeDtypeStruct((N, NUM_CLASSES), jnp.float32),
        in_specs=[pl.BlockSpec(memory_space=pltpu.MemorySpace.VMEM)] * 4,
        out_specs=pl.BlockSpec(memory_space=pltpu.MemorySpace.VMEM),
        cost_estimate=pl.CostEstimate(flops=flops, transcendentals=0,
                                      bytes_accessed=bytes_accessed),
    )(pT, w1T, b1, w2)


# =====================================================================
# Executor forward: runs the graph nodes in execution order.  All layout glue
# and constant folding lives here (XLA); the hot path is one Pallas program.
# =====================================================================
def executor_forward(x_nchw, w_conv_oihw, w_lin_out_in,
                     running_mean, running_std):
    x = x_nchw.astype(jnp.float32)

    # --- im2col (stride 1, pad 1), transposed so the spatial axis (N*HW=512)
    #     sits on the 128-lane axis inside the kernel ---
    x_nhwc = jnp.transpose(x, (0, 2, 3, 1))
    x_pad = jnp.pad(x_nhwc, ((0, 0), (1, 1), (1, 1), (0, 0)))
    taps = [x_pad[:, kh:kh + H, kw:kw + W, :]                 # (N, H, W, CIN)
            for kh in range(KH) for kw in range(KW)]
    pT = jnp.transpose(jnp.stack(taps, axis=0), (0, 4, 1, 2, 3))  # (9,CIN,N,H,W)
    pT = pT.reshape(KPATCH, N * HW)                            # (36, 512)

    # --- fold BatchNorm(eval, running stats) into the conv weights ---
    # TODO(synk): follows BasicExecutor's running_std buffer semantics (divide
    # by running_std, no eps); torch.nn.BatchNorm2d would use sqrt(running_var+eps).
    inv_std = 1.0 / running_std.astype(jnp.float32)
    w_scaled = w_conv_oihw.astype(jnp.float32) * inv_std[:, None, None, None]
    w1T = jnp.transpose(w_scaled, (0, 2, 3, 1)).reshape(COUT, KPATCH)  # (8, 36)
    b1 = (-running_mean.astype(jnp.float32) * inv_std).reshape(COUT, 1)

    # --- linear weight: PyTorch (out, in) -> (in, out); "in" is already the
    #     flatten(C, H, W) order the kernel produces, so no activation
    #     transpose is needed anywhere ---
    w2 = jnp.transpose(w_lin_out_in.astype(jnp.float32))       # (FEAT, NUM_CLASSES)

    return fused_forward(pT, w1T, b1, w2)


# =====================================================================
# Deterministic parameter init (mirrors BasicExecutor.initialize_tensor)
# =====================================================================
def xavier_uniform(key, shape, fan_in, fan_out):
    bound = math.sqrt(6.0 / (fan_in + fan_out))
    return jax.random.uniform(key, shape, jnp.float32, -bound, bound)


if __name__ == "__main__":
    key = jax.random.PRNGKey(0)
    k_x, k_conv, k_lin = jax.random.split(key, 3)

    # input (NCHW, like the PyTorch module's input node)
    x = jax.random.normal(k_x, (N, CIN, H, W), jnp.float32)

    # trainable tensors -> xavier_uniform_ (as in BasicExecutor.initialize_tensor)
    w_conv = xavier_uniform(k_conv, (COUT, CIN, KH, KW),
                            fan_in=CIN * KH * KW, fan_out=COUT * KH * KW)
    w_lin = xavier_uniform(k_lin, (NUM_CLASSES, FEAT),
                           fan_in=FEAT, fan_out=NUM_CLASSES)
    # TODO(synk): Linear bias omitted (xavier_uniform_ is undefined for 1-D tensors).
    # TODO(synk): BatchNorm affine (gamma/beta) not modeled (graph BN is affine-free).

    # buffers -> running_mean = zeros, running_std = ones
    running_mean = jnp.zeros((COUT,), jnp.float32)
    running_std = jnp.ones((COUT,), jnp.float32)

    out = jax.jit(executor_forward)(x, w_conv, w_lin, running_mean, running_std)
    out = jax.block_until_ready(out)

    # pure-JAX reference of the same graph (correctness check)
    ref_conv = jax.lax.conv_general_dilated(
        x, w_conv, (1, 1), "SAME",
        dimension_numbers=("NCHW", "OIHW", "NCHW"))
    ref_bn = (ref_conv - running_mean.reshape(1, -1, 1, 1)) \
             / running_std.reshape(1, -1, 1, 1)
    ref = jnp.maximum(ref_bn, 0.0).reshape(N, FEAT) @ w_lin.T

    assert out.shape == (N, NUM_CLASSES)
    assert jnp.allclose(out, ref, atol=1e-4, rtol=1e-4), \
        f"max err {jnp.max(jnp.abs(out - ref))}"
    print("KERNEL_OK")
</pallas_src>

<mosaic_0001>
module attributes {stable_mosaic.version = 11 : i64} {
  func.func @fused_forward_kernel(%arg0: memref<36x512xf32, #tpu.memory_space<vmem>>, %arg1: memref<8x36xf32, #tpu.memory_space<vmem>>, %arg2: memref<8x1xf32, #tpu.memory_space<vmem>>, %arg3: memref<2048x10xf32, #tpu.memory_space<vmem>>, %arg4: memref<2x10xf32, #tpu.memory_space<vmem>>) attributes {dimension_semantics = [], scalar_prefetch = 0 : i64, scratch_operands = 0 : i64, tpu.core_type = #tpu.core_type<tc>} {
    %c0 = arith.constant 0 : index
    %c0_0 = arith.constant 0 : index
    %0 = vector.load %arg1[%c0, %c0_0] : memref<8x36xf32, #tpu.memory_space<vmem>>, vector<8x36xf32>
    %c0_1 = arith.constant 0 : index
    %c0_2 = arith.constant 0 : index
    %1 = vector.load %arg0[%c0_1, %c0_2] : memref<36x512xf32, #tpu.memory_space<vmem>>, vector<36x512xf32>
    %cst = arith.constant dense<0.000000e+00> : vector<8x512xf32>
    %2 = tpu.matmul %0, %1, %cst {dimension_numbers = #tpu.dot_dimension_numbers<[1], [0], [0], [1], [0, 0, 1, 1], [], []>} : vector<8x36xf32>, vector<36x512xf32>, vector<8x512xf32> -> vector<8x512xf32>
    %c0_3 = arith.constant 0 : index
    %c0_4 = arith.constant 0 : index
    %3 = vector.load %arg2[%c0_3, %c0_4] : memref<8x1xf32, #tpu.memory_space<vmem>>, vector<8x1xf32>
    %4 = vector.broadcast %3 : vector<8x1xf32> to vector<8x512xf32>
    %5 = arith.addf %2, %4 : vector<8x512xf32>
    %cst_5 = arith.constant 0.000000e+00 : f32
    %6 = vector.broadcast %cst_5 : f32 to vector<8x512xf32>
    %7 = arith.maximumf %5, %6 : vector<8x512xf32>
    %8 = vector.extract_strided_slice %7 {offsets = [0, 0], sizes = [1, 256], strides = [1, 1]} : vector<8x512xf32> to vector<1x256xf32>
    %9 = vector.extract_strided_slice %7 {offsets = [1, 0], sizes = [1, 256], strides = [1, 1]} : vector<8x512xf32> to vector<1x256xf32>
    %10 = vector.extract_strided_slice %7 {offsets = [2, 0], sizes = [1, 256], strides = [1, 1]} : vector<8x512xf32> to vector<1x256xf32>
    %11 = vector.extract_strided_slice %7 {offsets = [3, 0], sizes = [1, 256], strides = [1, 1]} : vector<8x512xf32> to vector<1x256xf32>
    %12 = vector.extract_strided_slice %7 {offsets = [4, 0], sizes = [1, 256], strides = [1, 1]} : vector<8x512xf32> to vector<1x256xf32>
    %13 = vector.extract_strided_slice %7 {offsets = [5, 0], sizes = [1, 256], strides = [1, 1]} : vector<8x512xf32> to vector<1x256xf32>
    %14 = vector.extract_strided_slice %7 {offsets = [6, 0], sizes = [1, 256], strides = [1, 1]} : vector<8x512xf32> to vector<1x256xf32>
    %15 = vector.extract_strided_slice %7 {offsets = [7, 0], sizes = [1, 256], strides = [1, 1]} : vector<8x512xf32> to vector<1x256xf32>
    %16 = tpu.concatenate %8, %9, %10, %11, %12, %13, %14, %15 in 1 : vector<1x256xf32>, vector<1x256xf32>, vector<1x256xf32>, vector<1x256xf32>, vector<1x256xf32>, vector<1x256xf32>, vector<1x256xf32>, vector<1x256xf32> -> vector<1x2048xf32>
    %17 = vector.extract_strided_slice %7 {offsets = [0, 256], sizes = [1, 256], strides = [1, 1]} : vector<8x512xf32> to vector<1x256xf32>
    %18 = vector.extract_strided_slice %7 {offsets = [1, 256], sizes = [1, 256], strides = [1, 1]} : vector<8x512xf32> to vector<1x256xf32>
    %19 = vector.extract_strided_slice %7 {offsets = [2, 256], sizes = [1, 256], strides = [1, 1]} : vector<8x512xf32> to vector<1x256xf32>
    %20 = vector.extract_strided_slice %7 {offsets = [3, 256], sizes = [1, 256], strides = [1, 1]} : vector<8x512xf32> to vector<1x256xf32>
    %21 = vector.extract_strided_slice %7 {offsets = [4, 256], sizes = [1, 256], strides = [1, 1]} : vector<8x512xf32> to vector<1x256xf32>
    %22 = vector.extract_strided_slice %7 {offsets = [5, 256], sizes = [1, 256], strides = [1, 1]} : vector<8x512xf32> to vector<1x256xf32>
    %23 = vector.extract_strided_slice %7 {offsets = [6, 256], sizes = [1, 256], strides = [1, 1]} : vector<8x512xf32> to vector<1x256xf32>
    %24 = vector.extract_strided_slice %7 {offsets = [7, 256], sizes = [1, 256], strides = [1, 1]} : vector<8x512xf32> to vector<1x256xf32>
    %25 = tpu.concatenate %17, %18, %19, %20, %21, %22, %23, %24 in 1 : vector<1x256xf32>, vector<1x256xf32>, vector<1x256xf32>, vector<1x256xf32>, vector<1x256xf32>, vector<1x256xf32>, vector<1x256xf32>, vector<1x256xf32> -> vector<1x2048xf32>
    %26 = tpu.concatenate %16, %25 in 0 : vector<1x2048xf32>, vector<1x2048xf32> -> vector<2x2048xf32>
    %c0_6 = arith.constant 0 : index
    %c0_7 = arith.constant 0 : index
    %27 = vector.load %arg3[%c0_6, %c0_7] : memref<2048x10xf32, #tpu.memory_space<vmem>>, vector<2048x10xf32>
    %cst_8 = arith.constant dense<0.000000e+00> : vector<2x10xf32>
    %28 = tpu.matmul %26, %27, %cst_8 {dimension_numbers = #tpu.dot_dimension_numbers<[1], [0], [0], [1], [0, 0, 1, 1], [], []>} : vector<2x2048xf32>, vector<2048x10xf32>, vector<2x10xf32> -> vector<2x10xf32>
    %c0_9 = arith.constant 0 : index
    %c0_10 = arith.constant 0 : index
    %29 = vector.load %arg4[%c0_9, %c0_10] : memref<2x10xf32, #tpu.memory_space<vmem>>, vector<2x10xf32>
    tpu.vector_store %arg4[%c0_9, %c0_10], %28 {strides = array<i32>} : memref<2x10xf32, #tpu.memory_space<vmem>>, vector<2x10xf32>,
    return
  }
}

</mosaic_0001>

<bundles_post_ra>
// kernel: executor_forward.1
= control target key start
LH: loop header
LB: loop body
LE: loop exit
PB: predicated region body
PF: predicated region fallthrough
CT: control target
= control target key end

     0   :  { %vm49_vm0 = vcmask 1043456   ;;  %vm45_vm1 = vcmask 293888   ;;  %v882_v26 = vmov 0   ;;  %s1812_s0 = inlined_call_operand.vmem [shape: f32[36,512], index: 0, kind: input, shape index: {}]   ;;  %s1813_s1 = inlined_call_operand.vmem [shape: f32[8,36], index: 1, kind: input, shape index: {}]   ;;  %s1814_s2 = inlined_call_operand.vmem [shape: f32[8,1], index: 2, kind: input, shape index: {}]   ;;  %s1815_s3 = inlined_call_operand.vmem [shape: f32[2048,10], index: 3, kind: input, shape index: {}]   ;;  %s1816_s4 = inlined_call_operand.hbm [shape: f32[2,10], index: 4, kind: output, shape index: {}]  }
   0x1   :  { %v37_v0 = vld [vmem:[%s1812_s0 + $0x90] sm:$0xf]  ;;  %v38_v1 = vld [vmem:[%s1812_s0 + $0x98] sm:$0xf]  ;;  %v35_v4 = vld [vmem:[%s1812_s0 + $0x80] sm:$0xf]  ;;  %855 = vset.pattern.permute.xlu0 %v882_v26 }
   0x2   :  { %v33_v2 = vld [vmem:[%s1812_s0 + $0x70] sm:$0xff]  ;;  %837 = vmatpush.msk.msra.mxu2 %vm49_vm0, %v37_v0  ;;  %839 = vmatpush.msk.msra.mxu3 %vm49_vm0, %v38_v1  ;;  %v34_v3 = vld [vmem:[%s1812_s0 + $0x78] sm:$0xff]  ;;  %v36_v5 = vld [vmem:[%s1812_s0 + $0x88] sm:$0xf] }
   0x3   :  { %833 = vmatpush.msk.msra.mxu0 %vm49_vm0, %v35_v4  ;;  %835 = vmatpush.msk.msra.mxu1 %vm49_vm0, %v36_v5  ;;  %v29_v6 = vld [vmem:[%s1812_s0 + $0x50] sm:$0xff]  ;;  %v30_v7 = vld [vmem:[%s1812_s0 + $0x58] sm:$0xff]  ;;  %v31_v8 = vld [vmem:[%s1812_s0 + $0x60] sm:$0xff] }
   0x4   :  { %114 = vmatpush.msra.mxu2 %v33_v2  ;;  %134 = vmatpush.msra.mxu3 %v34_v3  ;;  %v32_v9 = vld [vmem:[%s1812_s0 + $0x68] sm:$0xff]  ;;  %v25_v10 = vld [vmem:[%s1812_s0 + $0x30] sm:$0xff]  ;;  %v26_v11 = vld [vmem:[%s1812_s0 + $0x38] sm:$0xff] }
   0x5   :  { %74 = vmatpush.msra.mxu0 %v31_v8  ;;  %94 = vmatpush.msra.mxu1 %v32_v9  ;;  %v27_v12 = vld [vmem:[%s1812_s0 + $0x40] sm:$0xff]  ;;  %v28_v13 = vld [vmem:[%s1812_s0 + $0x48] sm:$0xff]  ;;  %v21_v15 = vld [vmem:[%s1812_s0 + $0x10] sm:$0xff] }
   0x6   :  { %115 = vmatpush.msra.mxu2 %v29_v6  ;;  %135 = vmatpush.msra.mxu3 %v30_v7  ;;  %v23_v14 = vld [vmem:[%s1812_s0 + $0x20] sm:$0xff]  ;;  %v22_v16 = vld [vmem:[%s1812_s0 + $0x18] sm:$0xff]  ;;  %v24_v17 = vld [vmem:[%s1812_s0 + $0x28] sm:$0xff] }
   0x7   :  { %75 = vmatpush.msra.mxu0 %v27_v12  ;;  %95 = vmatpush.msra.mxu1 %v28_v13  ;;  %v18_v18 = vld [vmem:[%s1813_s1] sm:$0xff]  ;;  %v20_v20 = vld [vmem:[%s1812_s0 + $0x8] sm:$0xff]  ;;  %v286_v21 = vld [vmem:[%s1815_s3 + $0x178] sm:$0xff] }
   0x8   :  { %116 = vmatpush.msra.mxu2 %v25_v10  ;;  %136 = vmatpush.msra.mxu3 %v26_v11  ;;  %v19_v19 = vld [vmem:[%s1812_s0] sm:$0xff]  ;;  %v302_v23 = vld [vmem:[%s1815_s3 + $0x1f8] sm:$0xff]  ;;  %v285_v27 = vld [vmem:[%s1815_s3 + $0x170] sm:$0xff] }
   0x9   :  { %76 = vmatpush.msra.mxu0 %v23_v14  ;;  %96 = vmatpush.msra.mxu1 %v24_v17  ;;  %v39_v22 = vld [vmem:[%s1814_s2] sm:$0xff]  ;;  %v254_v24 = vld [vmem:[%s1815_s3 + $0x78] sm:$0xff]  ;;  %v301_v28 = vld [vmem:[%s1815_s3 + $0x1f0] sm:$0xff] }
   0xa   :  { %117 = vmatpush.msra.mxu2 %v21_v15  ;;  %137 = vmatpush.msra.mxu3 %v22_v16  ;;  %v270_v25 = vld [vmem:[%s1815_s3 + $0xf8] sm:$0xff]  ;;  %v253_v29 = vld [vmem:[%s1815_s3 + $0x70] sm:$0xff]  ;;  %v284_v31 = vld [vmem:[%s1815_s3 + $0x168] sm:$0xff] }
   0xb   :  { %838 = vmatmul.msk.f32.vlgmr.msra.gmra.mxu2 %vm45_vm1, %v18_v18  ;;  %840 = vmatmul.msk.f32.vlgmr.msra.gmra.mxu3 %vm45_vm1, %v18_v18  ;;  %v269_v30 = vld [vmem:[%s1815_s3 + $0xf0] sm:$0xff]  ;;  %v300_v32 = vld [vmem:[%s1815_s3 + $0x1e8] sm:$0xff]  ;;  %v283_v35 = vld [vmem:[%s1815_s3 + $0x160] sm:$0xff] }
   0xc   :  { %77 = vmatpush.msra.mxu0 %v19_v19  ;;  %97 = vmatpush.msra.mxu1 %v20_v20  ;;  %v252_v33 = vld [vmem:[%s1815_s3 + $0x68] sm:$0xff]  ;;  %v299_v36 = vld [vmem:[%s1815_s3 + $0x1e0] sm:$0xff]  ;;  %v282_v39 = vld [vmem:[%s1815_s3 + $0x158] sm:$0xff] }
   0xd   :  { %834 = vmatmul.msk.f32.vlgmr.msra.gmra.mxu0 %vm45_vm1, %v18_v18  ;;  %836 = vmatmul.msk.f32.vlgmr.msra.gmra.mxu1 %vm45_vm1, %v18_v18  ;;  %v268_v34 = vld [vmem:[%s1815_s3 + $0xe8] sm:$0xff]  ;;  %v251_v37 = vld [vmem:[%s1815_s3 + $0x60] sm:$0xff]  ;;  %v298_v40 = vld [vmem:[%s1815_s3 + $0x1d8] sm:$0xff] }
   0xe   :  { %535 = vmatpush.msrb.mxu2 %v286_v21  ;;  %42 = vperm.xlu0 %855, %v39_v22   ;;  %v267_v38 = vld [vmem:[%s1815_s3 + $0xe0] sm:$0xff]  ;;  %v250_v41 = vld [vmem:[%s1815_s3 + $0x58] sm:$0xff]  ;;  %v281_v43 = vld [vmem:[%s1815_s3 + $0x150] sm:$0xff] }
   0xf   :  { %555 = vmatpush.msrb.mxu3 %v302_v23  ;;  %495 = vmatpush.msrb.mxu0 %v254_v24  ;;  %v266_v42 = vld [vmem:[%s1815_s3 + $0xd8] sm:$0xff]  ;;  %v297_v44 = vld [vmem:[%s1815_s3 + $0x1d0] sm:$0xff]  ;;  %v280_v47 = vld [vmem:[%s1815_s3 + $0x148] sm:$0xff] }
  0x10   :  { %515 = vmatpush.msrb.mxu1 %v270_v25  ;;  %536 = vmatpush.msrb.mxu2 %v285_v27  ;;  %v249_v45 = vld [vmem:[%s1815_s3 + $0x50] sm:$0xff]  ;;  %v296_v48 = vld [vmem:[%s1815_s3 + $0x1c8] sm:$0xff]  ;;  %v279_v51 = vld [vmem:[%s1815_s3 + $0x140] sm:$0xff] }
  0x11   :  { %556 = vmatpush.msrb.mxu3 %v301_v28  ;;  %496 = vmatpush.msrb.mxu0 %v253_v29  ;;  %v265_v46 = vld [vmem:[%s1815_s3 + $0xd0] sm:$0xff]  ;;  %v248_v49 = vld [vmem:[%s1815_s3 + $0x48] sm:$0xff]  ;;  %v295_v52 = vld [vmem:[%s1815_s3 + $0x1c0] sm:$0xff] }
  0x12   :  { %516 = vmatpush.msrb.mxu1 %v269_v30  ;;  %537 = vmatpush.msrb.mxu2 %v284_v31  ;;  %v264_v50 = vld [vmem:[%s1815_s3 + $0xc8] sm:$0xff]  ;;  %v247_v53 = vld [vmem:[%s1815_s3 + $0x40] sm:$0xff]  ;;  %v278_v55 = vld [vmem:[%s1815_s3 + $0x138] sm:$0xff] }
  0x13   :  { %557 = vmatpush.msrb.mxu3 %v300_v32  ;;  %497 = vmatpush.msrb.mxu0 %v252_v33  ;;  %v263_v54 = vld [vmem:[%s1815_s3 + $0xc0] sm:$0xff]  ;;  %v294_v56 = vld [vmem:[%s1815_s3 + $0x1b8] sm:$0xff]  ;;  %v277_v59 = vld [vmem:[%s1815_s3 + $0x130] sm:$0xff] }
  0x14   :  { %517 = vmatpush.msrb.mxu1 %v268_v34  ;;  %538 = vmatpush.msrb.mxu2 %v283_v35  ;;  %v246_v57 = vld [vmem:[%s1815_s3 + $0x38] sm:$0xff]  ;;  %v293_v60 = vld [vmem:[%s1815_s3 + $0x1b0] sm:$0xff]  ;;  %v276_v63 = vld [vmem:[%s1815_s3 + $0x128] sm:$0xff] }
  0x15   :  { %558 = vmatpush.msrb.mxu3 %v299_v36  ;;  %498 = vmatpush.msrb.mxu0 %v251_v37  ;;  %v262_v58 = vld [vmem:[%s1815_s3 + $0xb8] sm:$0xff]  ;;  %v245_v61 = vld [vmem:[%s1815_s3 + $0x30] sm:$0xff]  ;;  %v292_v0 = vld [vmem:[%s1815_s3 + $0x1a8] sm:$0xff] }
  0x16   :  { %518 = vmatpush.msrb.mxu1 %v267_v38  ;;  %539 = vmatpush.msrb.mxu2 %v282_v39  ;;  %v261_v62 = vld [vmem:[%s1815_s3 + $0xb0] sm:$0xff]  ;;  %v244_v1 = vld [vmem:[%s1815_s3 + $0x28] sm:$0xff]  ;;  %v275_v3 = vld [vmem:[%s1815_s3 + $0x120] sm:$0xff] }
  0x17   :  { %559 = vmatpush.msrb.mxu3 %v298_v40  ;;  %499 = vmatpush.msrb.mxu0 %v250_v41  ;;  %v260_v2 = vld [vmem:[%s1815_s3 + $0xa8] sm:$0xff]  ;;  %v291_v4 = vld [vmem:[%s1815_s3 + $0x1a0] sm:$0xff]  ;;  %v274_v7 = vld [vmem:[%s1815_s3 + $0x118] sm:$0xff] }
  0x18   :  { %519 = vmatpush.msrb.mxu1 %v266_v42  ;;  %540 = vmatpush.msrb.mxu2 %v281_v43  ;;  %v243_v5 = vld [vmem:[%s1815_s3 + $0x20] sm:$0xff]  ;;  %v290_v8 = vld [vmem:[%s1815_s3 + $0x198] sm:$0xff]  ;;  %v273_v11 = vld [vmem:[%s1815_s3 + $0x110] sm:$0xff] }
  0x19   :  { %560 = vmatpush.msrb.mxu3 %v297_v44  ;;  %500 = vmatpush.msrb.mxu0 %v249_v45  ;;  %v259_v6 = vld [vmem:[%s1815_s3 + $0xa0] sm:$0xff]  ;;  %v242_v9 = vld [vmem:[%s1815_s3 + $0x18] sm:$0xff]  ;;  %v289_v12 = vld [vmem:[%s1815_s3 + $0x190] sm:$0xff] }
  0x1a   :  { %520 = vmatpush.msrb.mxu1 %v265_v46  ;;  %541 = vmatpush.msrb.mxu2 %v280_v47  ;;  %v258_v10 = vld [vmem:[%s1815_s3 + $0x98] sm:$0xff]  ;;  %v241_v13 = vld [vmem:[%s1815_s3 + $0x10] sm:$0xff]  ;;  %v272_v15 = vld [vmem:[%s1815_s3 + $0x108] sm:$0xff] }
  0x1b   :  { %561 = vmatpush.msrb.mxu3 %v296_v48  ;;  %501 = vmatpush.msrb.mxu0 %v248_v49  ;;  %v257_v14 = vld [vmem:[%s1815_s3 + $0x90] sm:$0xff]  ;;  %v288_v16 = vld [vmem:[%s1815_s3 + $0x188] sm:$0xff]  ;;  %v271_v19 = vld [vmem:[%s1815_s3 + $0x100] sm:$0xff] }
  0x1c   :  { %521 = vmatpush.msrb.mxu1 %v264_v50  ;;  %542 = vmatpush.msrb.mxu2 %v279_v51  ;;  %v240_v17 = vld [vmem:[%s1815_s3 + $0x8] sm:$0xff]  ;;  %v287_v20 = vld [vmem:[%s1815_s3 + $0x180] sm:$0xff]  ;;  %v350_v21 = vld [vmem:[%s1815_s3 + $0x378] sm:$0xff] }
  0x1d   :  { %562 = vmatpush.msrb.mxu3 %v295_v52  ;;  %502 = vmatpush.msrb.mxu0 %v247_v53  ;;  %v256_v18 = vld [vmem:[%s1815_s3 + $0x88] sm:$0xff]  ;;  %v366_v22 = vld [vmem:[%s1815_s3 + $0x3f8] sm:$0xff]  ;;  %v239_v23 = vld [vmem:[%s1815_s3] sm:$0xff] }
  0x1e   :  { %522 = vmatpush.msrb.mxu1 %v263_v54  ;;  %543 = vmatpush.msrb.mxu2 %v278_v55  ;;  %v255_v24 = vld [vmem:[%s1815_s3 + $0x80] sm:$0xff]  ;;  %v318_v25 = vld [vmem:[%s1815_s3 + $0x278] sm:$0xff] }
  0x1f   :  { %563 = vmatpush.msrb.mxu3 %v294_v56  ;;  %503 = vmatpush.msrb.mxu0 %v246_v57  ;;  %v334_v26 = vld [vmem:[%s1815_s3 + $0x2f8] sm:$0xff] }
  0x20   :  { %523 = vmatpush.msrb.mxu1 %v262_v58  ;;  %544 = vmatpush.msrb.mxu2 %v277_v59 }
  0x21   :  { %564 = vmatpush.msrb.mxu3 %v293_v60  ;;  %504 = vmatpush.msrb.mxu0 %v245_v61 }
  0x22   :  { %524 = vmatpush.msrb.mxu1 %v261_v62  ;;  %545 = vmatpush.msrb.mxu2 %v276_v63 }
  0x23   :  { %565 = vmatpush.msrb.mxu3 %v292_v0  ;;  %505 = vmatpush.msrb.mxu0 %v244_v1 }
  0x24   :  { %525 = vmatpush.msrb.mxu1 %v260_v2  ;;  %546 = vmatpush.msrb.mxu2 %v275_v3 }
  0x25   :  { %566 = vmatpush.msrb.mxu3 %v291_v4  ;;  %506 = vmatpush.msrb.mxu0 %v243_v5 }
  0x26   :  { %526 = vmatpush.msrb.mxu1 %v259_v6  ;;  %547 = vmatpush.msrb.mxu2 %v274_v7 }
  0x27   :  { %567 = vmatpush.msrb.mxu3 %v290_v8  ;;  %507 = vmatpush.msrb.mxu0 %v242_v9 }
  0x28   :  { %527 = vmatpush.msrb.mxu1 %v258_v10  ;;  %548 = vmatpush.msrb.mxu2 %v273_v11 }
  0x29   :  { %568 = vmatpush.msrb.mxu3 %v289_v12  ;;  %508 = vmatpush.msrb.mxu0 %v241_v13 }
  0x2a   :  { %528 = vmatpush.msrb.mxu1 %v257_v14  ;;  %549 = vmatpush.msrb.mxu2 %v272_v15 }
  0x2b   :  { %569 = vmatpush.msrb.mxu3 %v288_v16  ;;  %509 = vmatpush.msrb.mxu0 %v240_v17 }
  0x2c   :  { %529 = vmatpush.msrb.mxu1 %v256_v18  ;;  %550 = vmatpush.msrb.mxu2 %v271_v19 }
  0x2d   :  { %570 = vmatpush.msrb.mxu3 %v287_v20 }
  0x2e   :  { %9 = vsyncpa [#allocation3], 0  ;;  %615 = vmatpush.msra.mxu2 %v350_v21  ;;  %v349_v27 = vld [vmem:[%s1815_s3 + $0x370] sm:$0xff]  ;;  %510 = vmatpush.msrb.mxu0 %v239_v23  ;;  %v348_v31 = vld [vmem:[%s1815_s3 + $0x368] sm:$0xff]  ;;  %vm222_vm2 = vcmask 1040384   ;;  %s824_s26 = sshll.u32 %s1816_s4, 4  ;;  %s825_s26 = int_to_ptr.hbm [resolvable:$true] %s824_s26 }
  0x2f   :  { %635 = vmatpush.msra.mxu3 %v366_v22  ;;  %v365_v28 = vld [vmem:[%s1815_s3 + $0x3f0] sm:$0xff]  ;;  %530 = vmatpush.msrb.mxu1 %v255_v24  ;;  %v364_v32 = vld [vmem:[%s1815_s3 + $0x3e8] sm:$0xff]  ;;  %v347_v35 = vld [vmem:[%s1815_s3 + $0x360] sm:$0xff]  ;;  %vm815_vm3 = vcmask 74752  }
  0x30   :  { %v317_v29 = vld [vmem:[%s1815_s3 + $0x270] sm:$0xff]  ;;  %575 = vmatpush.msra.mxu0 %v318_v25  ;;  %616 = vmatpush.msra.mxu2 %v349_v27  ;;  %v316_v33 = vld [vmem:[%s1815_s3 + $0x268] sm:$0xff]  ;;  %v363_v36 = vld [vmem:[%s1815_s3 + $0x3e0] sm:$0xff] }
  0x31   :  { %v333_v30 = vld [vmem:[%s1815_s3 + $0x2f0] sm:$0xff]  ;;  %595 = vmatpush.msra.mxu1 %v334_v26  ;;  %636 = vmatpush.msra.mxu3 %v365_v28  ;;  %v332_v34 = vld [vmem:[%s1815_s3 + $0x2e8] sm:$0xff]  ;;  %v315_v37 = vld [vmem:[%s1815_s3 + $0x260] sm:$0xff] }
  0x32   :  { %576 = vmatpush.msra.mxu0 %v317_v29  ;;  %617 = vmatpush.msra.mxu2 %v348_v31  ;;  %v331_v38 = vld [vmem:[%s1815_s3 + $0x2e0] sm:$0xff]  ;;  %v346_v39 = vld [vmem:[%s1815_s3 + $0x358] sm:$0xff]  ;;  %v345_v43 = vld [vmem:[%s1815_s3 + $0x350] sm:$0xff] }
  0x33   :  { %596 = vmatpush.msra.mxu1 %v333_v30  ;;  %637 = vmatpush.msra.mxu3 %v364_v32  ;;  %v362_v40 = vld [vmem:[%s1815_s3 + $0x3d8] sm:$0xff]  ;;  %v361_v44 = vld [vmem:[%s1815_s3 + $0x3d0] sm:$0xff]  ;;  %v344_v47 = vld [vmem:[%s1815_s3 + $0x348] sm:$0xff] }
  0x34   :  { %577 = vmatpush.msra.mxu0 %v316_v33  ;;  %618 = vmatpush.msra.mxu2 %v347_v35  ;;  %v314_v41 = vld [vmem:[%s1815_s3 + $0x258] sm:$0xff]  ;;  %v313_v45 = vld [vmem:[%s1815_s3 + $0x250] sm:$0xff]  ;;  %v360_v48 = vld [vmem:[%s1815_s3 + $0x3c8] sm:$0xff] }
  0x35   :  { %597 = vmatpush.msra.mxu1 %v332_v34  ;;  %638 = vmatpush.msra.mxu3 %v363_v36  ;;  %v330_v42 = vld [vmem:[%s1815_s3 + $0x2d8] sm:$0xff]  ;;  %v329_v46 = vld [vmem:[%s1815_s3 + $0x2d0] sm:$0xff]  ;;  %v312_v49 = vld [vmem:[%s1815_s3 + $0x248] sm:$0xff] }
  0x36   :  { %578 = vmatpush.msra.mxu0 %v315_v37  ;;  %619 = vmatpush.msra.mxu2 %v346_v39  ;;  %v328_v50 = vld [vmem:[%s1815_s3 + $0x2c8] sm:$0xff]  ;;  %v343_v51 = vld [vmem:[%s1815_s3 + $0x340] sm:$0xff]  ;;  %v342_v55 = vld [vmem:[%s1815_s3 + $0x338] sm:$0xff] }
  0x37   :  { %598 = vmatpush.msra.mxu1 %v331_v38  ;;  %639 = vmatpush.msra.mxu3 %v362_v40  ;;  %v359_v52 = vld [vmem:[%s1815_s3 + $0x3c0] sm:$0xff]  ;;  %v358_v56 = vld [vmem:[%s1815_s3 + $0x3b8] sm:$0xff]  ;;  %v341_v59 = vld [vmem:[%s1815_s3 + $0x330] sm:$0xff] }
  0x38   :  { %579 = vmatpush.msra.mxu0 %v314_v41  ;;  %620 = vmatpush.msra.mxu2 %v345_v43  ;;  %v311_v53 = vld [vmem:[%s1815_s3 + $0x240] sm:$0xff]  ;;  %v310_v57 = vld [vmem:[%s1815_s3 + $0x238] sm:$0xff]  ;;  %v357_v60 = vld [vmem:[%s1815_s3 + $0x3b0] sm:$0xff] }
  0x39   :  { %599 = vmatpush.msra.mxu1 %v330_v42  ;;  %640 = vmatpush.msra.mxu3 %v361_v44  ;;  %v327_v54 = vld [vmem:[%s1815_s3 + $0x2c0] sm:$0xff]  ;;  %v326_v58 = vld [vmem:[%s1815_s3 + $0x2b8] sm:$0xff]  ;;  %v309_v61 = vld [vmem:[%s1815_s3 + $0x230] sm:$0xff] }
  0x3a   :  { %580 = vmatpush.msra.mxu0 %v313_v45  ;;  %621 = vmatpush.msra.mxu2 %v344_v47  ;;  %v325_v62 = vld [vmem:[%s1815_s3 + $0x2b0] sm:$0xff]  ;;  %v340_v63 = vld [vmem:[%s1815_s3 + $0x328] sm:$0xff]  ;;  %v339_v3 = vld [vmem:[%s1815_s3 + $0x320] sm:$0xff] }
  0x3b   :  { %600 = vmatpush.msra.mxu1 %v329_v46  ;;  %641 = vmatpush.msra.mxu3 %v360_v48  ;;  %v356_v0 = vld [vmem:[%s1815_s3 + $0x3a8] sm:$0xff]  ;;  %v355_v4 = vld [vmem:[%s1815_s3 + $0x3a0] sm:$0xff]  ;;  %v338_v7 = vld [vmem:[%s1815_s3 + $0x318] sm:$0xff] }
  0x3c   :  { %581 = vmatpush.msra.mxu0 %v312_v49  ;;  %622 = vmatpush.msra.mxu2 %v343_v51  ;;  %v308_v1 = vld [vmem:[%s1815_s3 + $0x228] sm:$0xff]  ;;  %v307_v5 = vld [vmem:[%s1815_s3 + $0x220] sm:$0xff]  ;;  %v354_v8 = vld [vmem:[%s1815_s3 + $0x398] sm:$0xff] }
  0x3d   :  { %601 = vmatpush.msra.mxu1 %v328_v50  ;;  %642 = vmatpush.msra.mxu3 %v359_v52  ;;  %v324_v2 = vld [vmem:[%s1815_s3 + $0x2a8] sm:$0xff]  ;;  %v323_v6 = vld [vmem:[%s1815_s3 + $0x2a0] sm:$0xff]  ;;  %v306_v9 = vld [vmem:[%s1815_s3 + $0x218] sm:$0xff] }
  0x3e   :  { %582 = vmatpush.msra.mxu0 %v311_v53  ;;  %623 = vmatpush.msra.mxu2 %v342_v55  ;;  %v322_v10 = vld [vmem:[%s1815_s3 + $0x298] sm:$0xff]  ;;  %v337_v11 = vld [vmem:[%s1815_s3 + $0x310] sm:$0xff]  ;;  %v336_v15 = vld [vmem:[%s1815_s3 + $0x308] sm:$0xff] }
  0x3f   :  { %602 = vmatpush.msra.mxu1 %v327_v54  ;;  %643 = vmatpush.msra.mxu3 %v358_v56  ;;  %v353_v12 = vld [vmem:[%s1815_s3 + $0x390] sm:$0xff]  ;;  %v352_v16 = vld [vmem:[%s1815_s3 + $0x388] sm:$0xff]  ;;  %v335_v19 = vld [vmem:[%s1815_s3 + $0x300] sm:$0xff] }
  0x40   :  { %583 = vmatpush.msra.mxu0 %v310_v57  ;;  %624 = vmatpush.msra.mxu2 %v341_v59  ;;  %v305_v13 = vld [vmem:[%s1815_s3 + $0x210] sm:$0xff]  ;;  %v304_v17 = vld [vmem:[%s1815_s3 + $0x208] sm:$0xff]  ;;  %v351_v20 = vld [vmem:[%s1815_s3 + $0x380] sm:$0xff] }
  0x41   :  { %603 = vmatpush.msra.mxu1 %v326_v58  ;;  %644 = vmatpush.msra.mxu3 %v357_v60  ;;  %v321_v14 = vld [vmem:[%s1815_s3 + $0x290] sm:$0xff]  ;;  %v320_v18 = vld [vmem:[%s1815_s3 + $0x288] sm:$0xff]  ;;  %v303_v21 = vld [vmem:[%s1815_s3 + $0x200] sm:$0xff] }
  0x42   :  { %584 = vmatpush.msra.mxu0 %v309_v61  ;;  %625 = vmatpush.msra.mxu2 %v340_v63  ;;  %v319_v22 = vld [vmem:[%s1815_s3 + $0x280] sm:$0xff]  ;;  %v414_v38 = vld [vmem:[%s1815_s3 + $0x578] sm:$0xff]  ;;  %v413_v48 = vld [vmem:[%s1815_s3 + $0x570] sm:$0xff] }
  0x43   :  { %604 = vmatpush.msra.mxu1 %v325_v62  ;;  %645 = vmatpush.msra.mxu3 %v356_v0  ;;  %v430_v39 = vld [vmem:[%s1815_s3 + $0x5f8] sm:$0xff]  ;;  %v429_v49 = vld [vmem:[%s1815_s3 + $0x5f0] sm:$0xff]  ;;  %v412_v52 = vld [vmem:[%s1815_s3 + $0x568] sm:$0xff] }
  0x44   :  { %585 = vmatpush.msra.mxu0 %v308_v1  ;;  %626 = vmatpush.msra.mxu2 %v339_v3  ;;  %v382_v44 = vld [vmem:[%s1815_s3 + $0x478] sm:$0xff]  ;;  %v381_v50 = vld [vmem:[%s1815_s3 + $0x470] sm:$0xff]  ;;  %v428_v53 = vld [vmem:[%s1815_s3 + $0x5e8] sm:$0xff] }
  0x45   :  { %605 = vmatpush.msra.mxu1 %v324_v2  ;;  %646 = vmatpush.msra.mxu3 %v355_v4  ;;  %v398_v45 = vld [vmem:[%s1815_s3 + $0x4f8] sm:$0xff]  ;;  %v397_v51 = vld [vmem:[%s1815_s3 + $0x4f0] sm:$0xff]  ;;  %v380_v56 = vld [vmem:[%s1815_s3 + $0x468] sm:$0xff] }
  0x46   :  { %586 = vmatpush.msra.mxu0 %v307_v5  ;;  %627 = vmatpush.msra.mxu2 %v338_v7  ;;  %v396_v57 = vld [vmem:[%s1815_s3 + $0x4e8] sm:$0xff]  ;;  %v411_v62 = vld [vmem:[%s1815_s3 + $0x560] sm:$0xff] }
  0x47   :  { %606 = vmatpush.msra.mxu1 %v323_v6  ;;  %647 = vmatpush.msra.mxu3 %v354_v8  ;;  %v427_v63 = vld [vmem:[%s1815_s3 + $0x5e0] sm:$0xff] }
  0x48   :  { %587 = vmatpush.msra.mxu0 %v306_v9  ;;  %628 = vmatpush.msra.mxu2 %v337_v11  ;;  %v379_v8 = vld [vmem:[%s1815_s3 + $0x460] sm:$0xff] }
  0x49   :  { %607 = vmatpush.msra.mxu1 %v322_v10  ;;  %648 = vmatpush.msra.mxu3 %v353_v12  ;;  %v395_v9 = vld [vmem:[%s1815_s3 + $0x4e0] sm:$0xff] }
  0x4a   :  { %588 = vmatpush.msra.mxu0 %v305_v13  ;;  %629 = vmatpush.msra.mxu2 %v336_v15  ;;  %v410_v15 = vld [vmem:[%s1815_s3 + $0x558] sm:$0xff] }
  0x4b   :  { %608 = vmatpush.msra.mxu1 %v321_v14  ;;  %649 = vmatpush.msra.mxu3 %v352_v16  ;;  %v426_v16 = vld [vmem:[%s1815_s3 + $0x5d8] sm:$0xff] }
  0x4c   :  { %589 = vmatpush.msra.mxu0 %v304_v17  ;;  %630 = vmatpush.msra.mxu2 %v335_v19 }
  0x4d   :  { %609 = vmatpush.msra.mxu1 %v320_v18  ;;  %650 = vmatpush.msra.mxu3 %v351_v20  ;;  %v378_v20 = vld [vmem:[%s1815_s3 + $0x458] sm:$0xff] }
  0x4e   :  { %590 = vmatpush.msra.mxu0 %v303_v21  ;;  %v394_v21 = vld [vmem:[%s1815_s3 + $0x4d8] sm:$0xff] }
  0x4f   :  { %610 = vmatpush.msra.mxu1 %v319_v22 }
  0x80   :  { %v43_v23 = vpop.permute.xlu0 %42 }
  0x8a   :  { %v79_v24 = vpop.f32.mrf.mxu0  ;;  %v99_v25 = vpop.f32.mrf.mxu1 }
  0x8b   :  { %v80_v26 = vadd.f32 %v79_v24, %v43_v23  ;;  %v100_v27 = vadd.f32 %v99_v25, %v43_v23  ;;  %v409_v24 = vld [vmem:[%s1815_s3 + $0x550] sm:$0xff] }
  0x8c   :  { %v425_v25 = vld [vmem:[%s1815_s3 + $0x5d0] sm:$0xff] }
  0x8d   :  { %v1359_v28 = vmax.f32 %v80_v26, 0.0  ;;  %v1361_v29 = vmax.f32 %v100_v27, 0.0  ;;  %v377_v26 = vld [vmem:[%s1815_s3 + $0x450] sm:$0xff] }
  0x8e   :  { %v119_v30 = vpop.f32.mrf.mxu2  ;;  %v139_v31 = vpop.f32.mrf.mxu3  ;;  %v393_v27 = vld [vmem:[%s1815_s3 + $0x4d0] sm:$0xff] }
  0x8f   :  { %v120_v32 = vadd.f32 %v119_v30, %v43_v23  ;;  %v140_v33 = vadd.f32 %v139_v31, %v43_v23  ;;  %v148_v34 = vrot.slane %v1359_v28, 1  ;;  %v149_v35 = vrot.slane %v1361_v29, 1  ;;  %v408_v30 = vld [vmem:[%s1815_s3 + $0x548] sm:$0xff] }
  0x90   :  { %v172_v55 = vrot.slane %v1359_v28, 7  ;;  %v173_v60 = vrot.slane %v1361_v29, 7  ;;  %v156_v0 = vrot.slane %v1359_v28, 3  ;;  %v157_v1 = vrot.slane %v1361_v29, 3  ;;  %v424_v31 = vld [vmem:[%s1815_s3 + $0x5c8] sm:$0xff] }
  0x91   :  { %v1365_v36 = vmax.f32 %v120_v32, 0.0  ;;  %v1367_v37 = vmax.f32 %v140_v33, 0.0  ;;  %v168_v2 = vrot.slane %v1359_v28, 6  ;;  %v169_v6 = vrot.slane %v1361_v29, 6  ;;  %v376_v32 = vld [vmem:[%s1815_s3 + $0x448] sm:$0xff] }
  0x92   :  { %v152_v18 = vrot.slane %v1359_v28, 2  ;;  %v153_v19 = vrot.slane %v1361_v29, 2  ;;  %v392_v33 = vld [vmem:[%s1815_s3 + $0x4c8] sm:$0xff] }
  0x93   :  { %v225_v40 = vsel %vm222_vm2, %v148_v34, %v1365_v36  ;;  %v226_v41 = vsel %vm222_vm2, %v149_v35, %v1367_v37  ;;  %v190_v42 = vrot.slane %v1365_v36, 7  ;;  %v191_v43 = vrot.slane %v1367_v37, 7  ;;  %v407_v34 = vld [vmem:[%s1815_s3 + $0x540] sm:$0xff] }
  0x94   :  { %551 = vmatmul.f32.vlgmr.msrb.gmra.mxu2 %v225_v40  ;;  %571 = vmatmul.f32.vlgmr.msrb.gmra.mxu3 %v226_v41  ;;  %v845_v54 = vrot.slane %v1365_v36, 10  ;;  %v846_v58 = vrot.slane %v1367_v37, 10  ;;  %v851_v3 = vrot.slane %v1365_v36, 13  ;;  %v852_v7 = vrot.slane %v1367_v37, 13  ;;  %v423_v35 = vld [vmem:[%s1815_s3 + $0x5c0] sm:$0xff]  ;;  %v406_v40 = vld [vmem:[%s1815_s3 + $0x538] sm:$0xff] }
  0x95   :  { %695 = vmatpush.msrb.mxu2 %v414_v38  ;;  %715 = vmatpush.msrb.mxu3 %v430_v39  ;;  %v223_v46 = vsel %vm222_vm2, %v1359_v28, %v190_v42  ;;  %v224_v47 = vsel %vm222_vm2, %v1361_v29, %v191_v43  ;;  %v204_v59 = vrot.slane %v190_v42, 7  ;;  %v205_v61 = vrot.slane %v191_v43, 7  ;;  %v375_v38 = vld [vmem:[%s1815_s3 + $0x440] sm:$0xff]  ;;  %v422_v41 = vld [vmem:[%s1815_s3 + $0x5b8] sm:$0xff] }
  0x96   :  { %511 = vmatmul.f32.vlgmr.msrb.gmra.mxu0 %v223_v46  ;;  %531 = vmatmul.f32.vlgmr.msrb.gmra.mxu1 %v224_v47  ;;  %v843_v10 = vrot.slane %v1365_v36, 9  ;;  %v844_v11 = vrot.slane %v1367_v37, 9  ;;  %v1446_v12 = vsel %vm222_vm2, %v168_v2, %v851_v3  ;;  %v229_v13 = vsel %vm222_vm2, %v156_v0, %v845_v54  ;;  %v391_v39 = vld [vmem:[%s1815_s3 + $0x4c0] sm:$0xff]  ;;  %v374_v42 = vld [vmem:[%s1815_s3 + $0x438] sm:$0xff]  ;;  %v373_v46 = vld [vmem:[%s1815_s3 + $0x430] sm:$0xff] }
  0x97   :  { %655 = vmatpush.msrb.mxu0 %v382_v44  ;;  %675 = vmatpush.msrb.mxu1 %v398_v45  ;;  %v1430_v4 = vsel %vm222_vm2, %v172_v55, %v204_v59  ;;  %v1433_v5 = vsel %vm222_vm2, %v173_v60, %v205_v61  ;;  %v230_v14 = vsel %vm222_vm2, %v157_v1, %v846_v58  ;;  %v390_v43 = vld [vmem:[%s1815_s3 + $0x4b8] sm:$0xff]  ;;  %v405_v44 = vld [vmem:[%s1815_s3 + $0x530] sm:$0xff]  ;;  %v371_v54 = vld [vmem:[%s1815_s3 + $0x420] sm:$0xff] }
  0x98   :  { %696 = vmatpush.msrb.mxu2 %v413_v48  ;;  %716 = vmatpush.msrb.mxu3 %v429_v49  ;;  %v1457_v17 = vsel %vm222_vm2, %v169_v6, %v852_v7  ;;  %v227_v22 = vsel %vm222_vm2, %v152_v18, %v843_v10  ;;  %v228_v23 = vsel %vm222_vm2, %v153_v19, %v844_v11  ;;  %v421_v45 = vld [vmem:[%s1815_s3 + $0x5b0] sm:$0xff]  ;;  %v404_v48 = vld [vmem:[%s1815_s3 + $0x528] sm:$0xff]  ;;  %v387_v55 = vld [vmem:[%s1815_s3 + $0x4a0] sm:$0xff]  ;;  %v849_v6 = vrot.slane %v1365_v36, 12 }
  0x99   :  { %656 = vmatpush.msrb.mxu0 %v381_v50  ;;  %676 = vmatpush.msrb.mxu1 %v397_v51  ;;  %v389_v47 = vld [vmem:[%s1815_s3 + $0x4b0] sm:$0xff]  ;;  %v420_v49 = vld [vmem:[%s1815_s3 + $0x5a8] sm:$0xff]  ;;  %v370_v58 = vld [vmem:[%s1815_s3 + $0x418] sm:$0xff]  ;;  %v850_v7 = vrot.slane %v1367_v37, 12  ;;  %v164_v10 = vrot.slane %v1359_v28, 5  ;;  %v165_v11 = vrot.slane %v1361_v29, 5 }
  0x9a   :  { %697 = vmatpush.msrb.mxu2 %v412_v52  ;;  %717 = vmatpush.msrb.mxu3 %v428_v53  ;;  %v372_v50 = vld [vmem:[%s1815_s3 + $0x428] sm:$0xff]  ;;  %v403_v52 = vld [vmem:[%s1815_s3 + $0x520] sm:$0xff]  ;;  %v386_v59 = vld [vmem:[%s1815_s3 + $0x498] sm:$0xff] }
  0x9b   :  { %657 = vmatpush.msrb.mxu0 %v380_v56  ;;  %677 = vmatpush.msrb.mxu1 %v396_v57  ;;  %v388_v51 = vld [vmem:[%s1815_s3 + $0x4a8] sm:$0xff]  ;;  %v419_v53 = vld [vmem:[%s1815_s3 + $0x5a0] sm:$0xff]  ;;  %v402_v56 = vld [vmem:[%s1815_s3 + $0x518] sm:$0xff]  ;;  %v233_v18 = vsel %vm222_vm2, %v164_v10, %v849_v6  ;;  %v234_v19 = vsel %vm222_vm2, %v165_v11, %v850_v7 }
  0x9c   :  { %698 = vmatpush.msrb.mxu2 %v411_v62  ;;  %718 = vmatpush.msrb.mxu3 %v427_v63  ;;  %v418_v57 = vld [vmem:[%s1815_s3 + $0x598] sm:$0xff]  ;;  %v401_v60 = vld [vmem:[%s1815_s3 + $0x510] sm:$0xff]  ;;  %v400_v0 = vld [vmem:[%s1815_s3 + $0x508] sm:$0xff] }
  0x9d   :  { %631 = vmatmul.f32.vlgmr.msra.gmra.mxu2 %v229_v13  ;;  %651 = vmatmul.f32.vlgmr.msra.gmra.mxu3 %v230_v14  ;;  %v417_v61 = vld [vmem:[%s1815_s3 + $0x590] sm:$0xff]  ;;  %v416_v1 = vld [vmem:[%s1815_s3 + $0x588] sm:$0xff]  ;;  %v478_v13 = vld [vmem:[%s1815_s3 + $0x778] sm:$0xff] }
  0x9e   :  { %658 = vmatpush.msrb.mxu0 %v379_v8  ;;  %678 = vmatpush.msrb.mxu1 %v395_v9  ;;  %v369_v62 = vld [vmem:[%s1815_s3 + $0x410] sm:$0xff]  ;;  %v368_v2 = vld [vmem:[%s1815_s3 + $0x408] sm:$0xff]  ;;  %v399_v8 = vld [vmem:[%s1815_s3 + $0x500] sm:$0xff] }
  0x9f   :  { %699 = vmatpush.msrb.mxu2 %v410_v15  ;;  %719 = vmatpush.msrb.mxu3 %v426_v16  ;;  %v385_v63 = vld [vmem:[%s1815_s3 + $0x490] sm:$0xff]  ;;  %v384_v3 = vld [vmem:[%s1815_s3 + $0x488] sm:$0xff]  ;;  %v415_v9 = vld [vmem:[%s1815_s3 + $0x580] sm:$0xff]  ;;  %v847_v15 = vrot.slane %v1365_v36, 11  ;;  %v848_v16 = vrot.slane %v1367_v37, 11  ;;  %v160_v36 = vrot.slane %v1359_v28, 4 }
  0xa0   :  { %591 = vmatmul.f32.vlgmr.msra.gmra.mxu0 %v227_v22  ;;  %611 = vmatmul.f32.vlgmr.msra.gmra.mxu1 %v228_v23  ;;  %v494_v14 = vld [vmem:[%s1815_s3 + $0x7f8] sm:$0xff]  ;;  %v161_v37 = vrot.slane %v1361_v29, 4  ;;  %v477_v28 = vld [vmem:[%s1815_s3 + $0x770] sm:$0xff]  ;;  %v467_v6 = vld [vmem:[%s1815_s3 + $0x720] sm:$0xff] }
  0xa1   :  { %659 = vmatpush.msrb.mxu0 %v378_v20  ;;  %679 = vmatpush.msrb.mxu1 %v394_v21  ;;  %v367_v20 = vld [vmem:[%s1815_s3 + $0x400] sm:$0xff]  ;;  %v446_v22 = vld [vmem:[%s1815_s3 + $0x678] sm:$0xff]  ;;  %v493_v29 = vld [vmem:[%s1815_s3 + $0x7f0] sm:$0xff] }
  0xa2   :  { %700 = vmatpush.msrb.mxu2 %v409_v24  ;;  %720 = vmatpush.msrb.mxu3 %v425_v25  ;;  %v383_v21 = vld [vmem:[%s1815_s3 + $0x480] sm:$0xff]  ;;  %v462_v23 = vld [vmem:[%s1815_s3 + $0x6f8] sm:$0xff]  ;;  %v231_v24 = vsel %vm222_vm2, %v160_v36, %v847_v15  ;;  %v232_v25 = vsel %vm222_vm2, %v161_v37, %v848_v16  ;;  %v465_v15 = vld [vmem:[%s1815_s3 + $0x710] sm:$0xff] }
  0xa3   :  { %660 = vmatpush.msrb.mxu0 %v377_v26  ;;  %680 = vmatpush.msrb.mxu1 %v393_v27  ;;  %v445_v26 = vld [vmem:[%s1815_s3 + $0x670] sm:$0xff]  ;;  %v483_v7 = vld [vmem:[%s1815_s3 + $0x7a0] sm:$0xff]  ;;  %v466_v10 = vld [vmem:[%s1815_s3 + $0x718] sm:$0xff] }
  0xa4   :  { %701 = vmatpush.msrb.mxu2 %v408_v30  ;;  %721 = vmatpush.msrb.mxu3 %v424_v31  ;;  %v461_v27 = vld [vmem:[%s1815_s3 + $0x6f0] sm:$0xff]  ;;  %v476_v30 = vld [vmem:[%s1815_s3 + $0x768] sm:$0xff]  ;;  %v482_v11 = vld [vmem:[%s1815_s3 + $0x798] sm:$0xff] }
  0xa5   :  { %661 = vmatpush.msrb.mxu0 %v376_v32  ;;  %681 = vmatpush.msrb.mxu1 %v392_v33  ;;  %v492_v31 = vld [vmem:[%s1815_s3 + $0x7e8] sm:$0xff]  ;;  %v481_v16 = vld [vmem:[%s1815_s3 + $0x790] sm:$0xff] }
  0xa6   :  { %702 = vmatpush.msrb.mxu2 %v407_v34  ;;  %722 = vmatpush.msrb.mxu3 %v423_v35  ;;  %v444_v32 = vld [vmem:[%s1815_s3 + $0x668] sm:$0xff]  ;;  %v475_v34 = vld [vmem:[%s1815_s3 + $0x760] sm:$0xff] }
  0xa7   :  { %662 = vmatpush.msrb.mxu0 %v375_v38  ;;  %682 = vmatpush.msrb.mxu1 %v391_v39  ;;  %v460_v33 = vld [vmem:[%s1815_s3 + $0x6e8] sm:$0xff]  ;;  %v491_v35 = vld [vmem:[%s1815_s3 + $0x7e0] sm:$0xff] }
  0xa8   :  { %703 = vmatpush.msrb.mxu2 %v406_v40  ;;  %723 = vmatpush.msrb.mxu3 %v422_v41  ;;  %v443_v38 = vld [vmem:[%s1815_s3 + $0x660] sm:$0xff]  ;;  %v474_v40 = vld [vmem:[%s1815_s3 + $0x758] sm:$0xff]  ;;  %v432_v36 = vld [vmem:[%s1815_s3 + $0x608] sm:$0xff] }
  0xa9   :  { %663 = vmatpush.msrb.mxu0 %v374_v42  ;;  %683 = vmatpush.msrb.mxu1 %v390_v43  ;;  %v459_v39 = vld [vmem:[%s1815_s3 + $0x6e0] sm:$0xff]  ;;  %v490_v41 = vld [vmem:[%s1815_s3 + $0x7d8] sm:$0xff]  ;;  %v448_v37 = vld [vmem:[%s1815_s3 + $0x688] sm:$0xff] }
  0xaa   :  { %704 = vmatpush.msrb.mxu2 %v405_v44  ;;  %724 = vmatpush.msrb.mxu3 %v421_v45  ;;  %v442_v42 = vld [vmem:[%s1815_s3 + $0x658] sm:$0xff]  ;;  %v473_v44 = vld [vmem:[%s1815_s3 + $0x750] sm:$0xff] }
  0xab   :  { %664 = vmatpush.msrb.mxu0 %v373_v46  ;;  %684 = vmatpush.msrb.mxu1 %v389_v47  ;;  %v458_v43 = vld [vmem:[%s1815_s3 + $0x6d8] sm:$0xff]  ;;  %v489_v45 = vld [vmem:[%s1815_s3 + $0x7d0] sm:$0xff] }
  0xac   :  { %705 = vmatpush.msrb.mxu2 %v404_v48  ;;  %725 = vmatpush.msrb.mxu3 %v420_v49  ;;  %v441_v46 = vld [vmem:[%s1815_s3 + $0x650] sm:$0xff]  ;;  %v472_v48 = vld [vmem:[%s1815_s3 + $0x748] sm:$0xff] }
  0xad   :  { %665 = vmatpush.msrb.mxu0 %v372_v50  ;;  %685 = vmatpush.msrb.mxu1 %v388_v51  ;;  %v457_v47 = vld [vmem:[%s1815_s3 + $0x6d0] sm:$0xff]  ;;  %v488_v49 = vld [vmem:[%s1815_s3 + $0x7c8] sm:$0xff] }
  0xae   :  { %706 = vmatpush.msrb.mxu2 %v403_v52  ;;  %726 = vmatpush.msrb.mxu3 %v419_v53  ;;  %v440_v50 = vld [vmem:[%s1815_s3 + $0x648] sm:$0xff]  ;;  %v471_v52 = vld [vmem:[%s1815_s3 + $0x740] sm:$0xff] }
  0xaf   :  { %666 = vmatpush.msrb.mxu0 %v371_v54  ;;  %686 = vmatpush.msrb.mxu1 %v387_v55  ;;  %v456_v51 = vld [vmem:[%s1815_s3 + $0x6c8] sm:$0xff]  ;;  %v487_v53 = vld [vmem:[%s1815_s3 + $0x7c0] sm:$0xff] }
  0xb0   :  { %707 = vmatpush.msrb.mxu2 %v402_v56  ;;  %727 = vmatpush.msrb.mxu3 %v418_v57  ;;  %v439_v54 = vld [vmem:[%s1815_s3 + $0x640] sm:$0xff]  ;;  %v470_v56 = vld [vmem:[%s1815_s3 + $0x738] sm:$0xff] }
  0xb1   :  { %667 = vmatpush.msrb.mxu0 %v370_v58  ;;  %687 = vmatpush.msrb.mxu1 %v386_v59  ;;  %v455_v55 = vld [vmem:[%s1815_s3 + $0x6c0] sm:$0xff]  ;;  %v486_v57 = vld [vmem:[%s1815_s3 + $0x7b8] sm:$0xff] }
  0xb2   :  { %708 = vmatpush.msrb.mxu2 %v401_v60  ;;  %728 = vmatpush.msrb.mxu3 %v417_v61  ;;  %v438_v58 = vld [vmem:[%s1815_s3 + $0x638] sm:$0xff]  ;;  %v469_v60 = vld [vmem:[%s1815_s3 + $0x730] sm:$0xff] }
  0xb3   :  { %668 = vmatpush.msrb.mxu0 %v369_v62  ;;  %688 = vmatpush.msrb.mxu1 %v385_v63  ;;  %v454_v59 = vld [vmem:[%s1815_s3 + $0x6b8] sm:$0xff]  ;;  %v485_v61 = vld [vmem:[%s1815_s3 + $0x7b0] sm:$0xff] }
  0xb4   :  { %709 = vmatpush.msrb.mxu2 %v400_v0  ;;  %729 = vmatpush.msrb.mxu3 %v416_v1  ;;  %v437_v62 = vld [vmem:[%s1815_s3 + $0x630] sm:$0xff]  ;;  %v468_v0 = vld [vmem:[%s1815_s3 + $0x728] sm:$0xff] }
  0xb5   :  { %669 = vmatpush.msrb.mxu0 %v368_v2  ;;  %689 = vmatpush.msrb.mxu1 %v384_v3  ;;  %v453_v63 = vld [vmem:[%s1815_s3 + $0x6b0] sm:$0xff]  ;;  %v484_v1 = vld [vmem:[%s1815_s3 + $0x7a8] sm:$0xff] }
  0xb6   :  { %710 = vmatpush.msrb.mxu2 %v399_v8  ;;  %730 = vmatpush.msrb.mxu3 %v415_v9  ;;  %v436_v2 = vld [vmem:[%s1815_s3 + $0x628] sm:$0xff]  ;;  %v435_v8 = vld [vmem:[%s1815_s3 + $0x620] sm:$0xff] }
  0xb7   :  { %711 = vmatmul.f32.vlgmr.msrb.gmra.mxu2 %v233_v18  ;;  %731 = vmatmul.f32.vlgmr.msrb.gmra.mxu3 %v234_v19  ;;  %v452_v3 = vld [vmem:[%s1815_s3 + $0x6a8] sm:$0xff]  ;;  %v451_v9 = vld [vmem:[%s1815_s3 + $0x6a0] sm:$0xff]  ;;  %v433_v18 = vld [vmem:[%s1815_s3 + $0x610] sm:$0xff] }
  0xb8   :  { %775 = vmatpush.msra.mxu2 %v478_v13  ;;  %795 = vmatpush.msra.mxu3 %v494_v14  ;;  %v434_v13 = vld [vmem:[%s1815_s3 + $0x618] sm:$0xff]  ;;  %v449_v19 = vld [vmem:[%s1815_s3 + $0x690] sm:$0xff] }
  0xb9   :  { %670 = vmatpush.msrb.mxu0 %v367_v20  ;;  %690 = vmatpush.msrb.mxu1 %v383_v21  ;;  %v450_v14 = vld [vmem:[%s1815_s3 + $0x698] sm:$0xff]  ;;  %v464_v20 = vld [vmem:[%s1815_s3 + $0x708] sm:$0xff] }
  0xba   :  { %671 = vmatmul.f32.vlgmr.msrb.gmra.mxu0 %v231_v24  ;;  %691 = vmatmul.f32.vlgmr.msrb.gmra.mxu1 %v232_v25  ;;  %v480_v21 = vld [vmem:[%s1815_s3 + $0x788] sm:$0xff]  ;;  %v431_v24 = vld [vmem:[%s1815_s3 + $0x600] sm:$0xff] }
  0xbb   :  { %735 = vmatpush.msra.mxu0 %v446_v22  ;;  %755 = vmatpush.msra.mxu1 %v462_v23  ;;  %v463_v22 = vld [vmem:[%s1815_s3 + $0x700] sm:$0xff] }
  0xbc   :  { %776 = vmatpush.msra.mxu2 %v477_v28  ;;  %796 = vmatpush.msra.mxu3 %v493_v29  ;;  %v479_v23 = vld [vmem:[%s1815_s3 + $0x780] sm:$0xff] }
  0xbd   :  { %736 = vmatpush.msra.mxu0 %v445_v26  ;;  %756 = vmatpush.msra.mxu1 %v461_v27  ;;  %v447_v25 = vld [vmem:[%s1815_s3 + $0x680] sm:$0xff]  ;;  %s883_s3 = smov [#allocation2]  }
  0xbe   :  { %777 = vmatpush.msra.mxu2 %v476_v30  ;;  %797 = vmatpush.msra.mxu3 %v492_v31  ;;  %s822_s23 = sshll.u32 %s883_s3, 4  ;;  %s823_s23 = int_to_ptr.vmem [resolvable:$true] %s822_s23 }
  0xbf   :  { %737 = vmatpush.msra.mxu0 %v444_v32  ;;  %757 = vmatpush.msra.mxu1 %v460_v33 }
  0xc0   :  { %778 = vmatpush.msra.mxu2 %v475_v34  ;;  %798 = vmatpush.msra.mxu3 %v491_v35 }
  0xc1   :  { %738 = vmatpush.msra.mxu0 %v443_v38  ;;  %758 = vmatpush.msra.mxu1 %v459_v39 }
  0xc2   :  { %779 = vmatpush.msra.mxu2 %v474_v40  ;;  %799 = vmatpush.msra.mxu3 %v490_v41 }
  0xc3   :  { %739 = vmatpush.msra.mxu0 %v442_v42  ;;  %759 = vmatpush.msra.mxu1 %v458_v43 }
  0xc4   :  { %780 = vmatpush.msra.mxu2 %v473_v44  ;;  %800 = vmatpush.msra.mxu3 %v489_v45 }
  0xc5   :  { %740 = vmatpush.msra.mxu0 %v441_v46  ;;  %760 = vmatpush.msra.mxu1 %v457_v47 }
  0xc6   :  { %781 = vmatpush.msra.mxu2 %v472_v48  ;;  %801 = vmatpush.msra.mxu3 %v488_v49 }
  0xc7   :  { %741 = vmatpush.msra.mxu0 %v440_v50  ;;  %761 = vmatpush.msra.mxu1 %v456_v51 }
  0xc8   :  { %782 = vmatpush.msra.mxu2 %v471_v52  ;;  %802 = vmatpush.msra.mxu3 %v487_v53 }
  0xc9   :  { %742 = vmatpush.msra.mxu0 %v439_v54  ;;  %762 = vmatpush.msra.mxu1 %v455_v55 }
  0xca   :  { %783 = vmatpush.msra.mxu2 %v470_v56  ;;  %803 = vmatpush.msra.mxu3 %v486_v57 }
  0xcb   :  { %743 = vmatpush.msra.mxu0 %v438_v58  ;;  %763 = vmatpush.msra.mxu1 %v454_v59 }
  0xcc   :  { %784 = vmatpush.msra.mxu2 %v469_v60  ;;  %804 = vmatpush.msra.mxu3 %v485_v61 }
  0xcd   :  { %744 = vmatpush.msra.mxu0 %v437_v62  ;;  %764 = vmatpush.msra.mxu1 %v453_v63 }
  0xce   :  { %785 = vmatpush.msra.mxu2 %v468_v0  ;;  %805 = vmatpush.msra.mxu3 %v484_v1 }
  0xcf   :  { %745 = vmatpush.msra.mxu0 %v436_v2  ;;  %765 = vmatpush.msra.mxu1 %v452_v3 }
  0xd0   :  { %786 = vmatpush.msra.mxu2 %v467_v6  ;;  %806 = vmatpush.msra.mxu3 %v483_v7 }
  0xd1   :  { %746 = vmatpush.msra.mxu0 %v435_v8  ;;  %766 = vmatpush.msra.mxu1 %v451_v9 }
  0xd2   :  { %787 = vmatpush.msra.mxu2 %v466_v10  ;;  %807 = vmatpush.msra.mxu3 %v482_v11 }
  0xd3   :  { %747 = vmatpush.msra.mxu0 %v434_v13  ;;  %767 = vmatpush.msra.mxu1 %v450_v14 }
  0xd4   :  { %788 = vmatpush.msra.mxu2 %v465_v15  ;;  %808 = vmatpush.msra.mxu3 %v481_v16 }
  0xd5   :  { %748 = vmatpush.msra.mxu0 %v433_v18  ;;  %768 = vmatpush.msra.mxu1 %v449_v19 }
  0xd6   :  { %789 = vmatpush.msra.mxu2 %v464_v20  ;;  %809 = vmatpush.msra.mxu3 %v480_v21 }
  0xd7   :  { %749 = vmatpush.msra.mxu0 %v432_v36  ;;  %769 = vmatpush.msra.mxu1 %v448_v37 }
  0xd8   :  { %790 = vmatpush.msra.mxu2 %v463_v22  ;;  %810 = vmatpush.msra.mxu3 %v479_v23 }
  0xd9   :  { %791 = vmatmul.f32.vlgmr.msra.gmra.mxu2 %v1430_v4  ;;  %811 = vmatmul.f32.vlgmr.msra.gmra.mxu3 %v1433_v5 }
  0xda   :  { %750 = vmatpush.msra.mxu0 %v431_v24  ;;  %770 = vmatpush.msra.mxu1 %v447_v25 }
  0xdb   :  { %751 = vmatmul.f32.vlgmr.msra.gmra.mxu0 %v1446_v12  ;;  %771 = vmatmul.f32.vlgmr.msra.gmra.mxu1 %v1457_v17 }
 0x113   :  { %v512_v28 = vpop.f32.mrf.mxu0  ;;  %v532_v29 = vpop.f32.mrf.mxu1 }
 0x114   :  { %v533_v27 = vadd.f32 %v532_v29, %v512_v28 }
 0x117   :  { %v552_v26 = vpop.f32.mrf.mxu2  ;;  %v572_v31 = vpop.f32.mrf.mxu3 }
 0x118   :  { %v553_v30 = vadd.f32 %v552_v26, %v533_v27 }
 0x11a   :  { %v573_v32 = vadd.f32 %v572_v31, %v553_v30 }
 0x11d   :  { %v592_v33 = vpop.f32.mrf.mxu0  ;;  %v612_v35 = vpop.f32.mrf.mxu1 }
 0x11e   :  { %v593_v34 = vadd.f32 %v592_v33, %v573_v32 }
 0x120   :  { %v613_v38 = vadd.f32 %v612_v35, %v593_v34  ;;  %v632_v4 = vpop.f32.mrf.mxu2  ;;  %v652_v5 = vpop.f32.mrf.mxu3 }
 0x122   :  { %v633_v39 = vadd.f32 %v632_v4, %v613_v38 }
 0x124   :  { %v653_v41 = vadd.f32 %v652_v5, %v633_v39 }
 0x137   :  { %v672_v40 = vpop.f32.mrf.mxu0  ;;  %v692_v12 = vpop.f32.mrf.mxu1 }
 0x138   :  { %v673_v42 = vadd.f32 %v672_v40, %v653_v41 }
 0x13a   :  { %v693_v43 = vadd.f32 %v692_v12, %v673_v42  ;;  %v712_v17 = vpop.f32.mrf.mxu2  ;;  %v732_v45 = vpop.f32.mrf.mxu3 }
 0x13c   :  { %v713_v44 = vadd.f32 %v712_v17, %v693_v43 }
 0x13e   :  { %v733_v46 = vadd.f32 %v732_v45, %v713_v44 }
 0x158   :  { %v752_v47 = vpop.f32.mrf.mxu0  ;;  %v772_v49 = vpop.f32.mrf.mxu1 }
 0x159   :  { %v753_v48 = vadd.f32 %v752_v47, %v733_v46 }
 0x15b   :  { %v773_v50 = vadd.f32 %v772_v49, %v753_v48 }
 0x15c   :  { %v792_v51 = vpop.f32.mrf.mxu2  ;;  %v812_v53 = vpop.f32.mrf.mxu3 }
 0x15d   :  { %v793_v52 = vadd.f32 %v792_v51, %v773_v50 }
 0x15f   :  { %v813_v54 = vadd.f32 %v812_v53, %v793_v52 }
 0x161   :  { %816 = vst.msk [vmem:[#allocation2] sm:$0x3] %vm815_vm3, %v813_v54 }
 0x162   :  { %827 = dma.vmem_to_hbm [thread:$0]  %s823_s23, 32, %s825_s26, [#allocation3]  }
 0x163   :  { %880 = dma.done.wait [#allocation3], 32  }
 0x164   :  { %881 = vsyncadd [#allocation3], 4294967264 }
 0x165   :  { %832 = vsyncpa [#allocation3], 1 }

</bundles_post_ra>
